<compile_context>
chip_gen: v7x
topology: tpu7x:2x2x1
jax: 0.10.0
libtpu: 0.0.40
codegen_flags: <defaults>
</compile_context>

<pallas_src>
import math

import jax
import jax.numpy as jnp
from jax.experimental import pallas as pl
from jax.experimental.pallas import tpu as pltpu


def _round_up(a, b):
    return (a + b - 1) // b * b


def _make_group_norm_kernel(eps, inv_n, rb, chunk, apply_dtype):
    """rb: rows per block (= NB*G, multiple of 8). chunk: lane chunk (divides Lp)."""

    def kernel(x_ref, wb_ref, o_ref):
        lp = x_ref.shape[1]
        nchunks = lp // chunk

        # ---- pass 1: per-row (= per-group) sum / sum-of-squares in f32 ------
        # Lane-chunked so the live f32 temporaries are one chunk, not the block.
        s = jnp.zeros((rb, 1), jnp.float32)
        ss = jnp.zeros((rb, 1), jnp.float32)
        for c in range(nchunks):                       # static, fully unrolled
            lo, hi = c * chunk, (c + 1) * chunk
            xc = x_ref[:, lo:hi].astype(jnp.float32)
            s = s + jnp.sum(xc, axis=-1, keepdims=True)
            ss = ss + jnp.sum(xc * xc, axis=-1, keepdims=True)

        mean = s * inv_n                               # (rb, 1)
        # E[x^2] - E[x]^2 in f32; clamp guards cancellation for large |mean|.
        var = jnp.maximum(ss * inv_n - mean * mean, 0.0)
        inv = jax.lax.rsqrt(var + eps)                 # EUP slot, free under DMA

        mean_a = mean.astype(apply_dtype)
        inv_a = inv.astype(apply_dtype)

        # ---- pass 2: normalize + per-channel affine (lane-chunked) ----------
        # Second full-density read of x_ref; HBM traffic stays 1 read + 1 write.
        for c in range(nchunks):
            lo, hi = c * chunk, (c + 1) * chunk
            xc = x_ref[:, lo:hi].astype(apply_dtype)
            wc = wb_ref[0:rb, lo:hi]                   # weight rows
            bc = wb_ref[rb:2 * rb, lo:hi]              # bias rows
            yc = (xc - mean_a) * inv_a * wc + bc
            o_ref[:, lo:hi] = yc.astype(o_ref.dtype)

    return kernel


def group_norm_pallas(x, weight, bias, num_groups, eps=1e-5,
                      target_block_bytes=2 * 1024 * 1024):
    """GroupNorm forward (F.group_norm semantics). x: (N, C, H, W); weight/bias: (C,)."""
    N, C, H, W = x.shape
    G = num_groups
    assert C % G == 0
    Cg = C // G
    HW = H * W
    L = Cg * HW                         # true per-group element count
    Lp = _round_up(L, 128)              # lane-padded (zero pad; stats use true count)

    # Stats always in f32; pass-2 apply in bf16 for bf16 inputs (v6e/v7x bf16
    # VALUs; on v5e it is merely correct), f32 otherwise.
    apply_dtype = jnp.bfloat16 if x.dtype == jnp.bfloat16 else jnp.float32

    # ---- block sizing --------------------------------------------------------
    # A block holds NB whole samples = NB*G rows; NB*G must be a multiple of 8.
    m8 = 8 // math.gcd(G, 8)                             # min samples per block
    bps = G * Lp * 4                                     # f32 slab bytes / sample
    target = min(int(target_block_bytes), 4 * 1024 * 1024)  # cap for v7x (64 MiB VMEM)

    nb_vmem = max(m8, (target // bps) // m8 * m8)        # biggest block under target
    nb_floor = max(m8, ((1 << 20) // bps) // m8 * m8)    # ~1 MiB block floor
    nb_floor = min(nb_floor, nb_vmem)
    nb = nb_vmem
    if N >= 4 * nb_floor:
        # Prefer >= 4 grid steps (>= 2 per TensorCore on v7x) when each step
        # still carries >= ~1 MiB.
        nb = max(nb_floor, min(nb, max(m8, (N // 4) // m8 * m8)))
    nb = min(nb, _round_up(N, m8))                       # never exceed padded batch
    NB = max(nb, m8)
    # TODO(synk): no inner spatial tiling — a single sample slab (G*Lp*4 bytes)
    # larger than the VMEM budget would need chunked stats in scratch.

    RB = NB * G                                          # rows per block (mult. of 8)
    N_pad = _round_up(N, NB)
    rows, rows_pad = N * G, N_pad * G
    grid = (N_pad // NB,)

    # ---- layout plumbing (wrapper-side reshape/pad; no compute hoisted) ------
    x2 = x.reshape(N, G, L)
    if Lp != L:
        x2 = jnp.pad(x2, ((0, 0), (0, 0), (0, Lp - L)))  # zero lanes contribute 0 to stats
    x2 = x2.reshape(rows, Lp)
    if rows_pad != rows:
        x2 = jnp.pad(x2, ((0, rows_pad - rows), (0, 0)))  # padded samples cropped below

    # weight/bias expanded to one block-shaped slab (row r -> group g = r % G,
    # lane l -> channel l // HW within the group), packed into a single
    # resident input: rows [0:RB] = weight, rows [RB:2RB] = bias.
    w_gl = jnp.broadcast_to(weight.reshape(G, Cg, 1), (G, Cg, HW)).reshape(G, L)
    b_gl = jnp.broadcast_to(bias.reshape(G, Cg, 1), (G, Cg, HW)).reshape(G, L)
    if Lp != L:
        w_gl = jnp.pad(w_gl, ((0, 0), (0, Lp - L)))
        b_gl = jnp.pad(b_gl, ((0, 0), (0, Lp - L)))
    wb = jnp.concatenate([jnp.tile(w_gl, (NB, 1)),
                          jnp.tile(b_gl, (NB, 1))], axis=0).astype(apply_dtype)

    # Lane chunking: bound the live f32 temporaries to ~512 KiB per chunk.
    chunk = Lp
    if RB * Lp * 4 > 512 * 1024:
        cap = max(128, ((512 * 1024) // (RB * 4)) // 128 * 128)
        chunk = 128                                       # 128 always divides Lp
        for c in range(cap, 127, -128):
            if Lp % c == 0:
                chunk = c
                break

    x_spec = pl.BlockSpec((RB, Lp), lambda i: (i, 0))
    o_spec = pl.BlockSpec((RB, Lp), lambda i: (i, 0))
    wb_spec = pl.BlockSpec((2 * RB, Lp), lambda i: (0, 0))  # resident, one DMA

    out2 = pl.pallas_call(
        _make_group_norm_kernel(eps, 1.0 / L, RB, chunk, apply_dtype),
        out_shape=jax.ShapeDtypeStruct((rows_pad, Lp), x.dtype),
        grid_spec=pltpu.PrefetchScalarGridSpec(
            num_scalar_prefetch=0,
            grid=grid,
            in_specs=[x_spec, wb_spec],
            out_specs=o_spec,
        ),
        compiler_params=pltpu.CompilerParams(
            dimension_semantics=("parallel",),
            # Footprint / step ~= 2x in + 2x out (double-buffered, x dtype)
            # + resident wb (2 blocks) + ~2 chunk-sized f32 temps: with the
            # 4 MiB block cap this stays well under 48 MiB (v7x VMEM = 64 MiB).
            vmem_limit_bytes=48 * 1024 * 1024,
        ),
    )(x2, wb)

    return out2[:rows, :L].reshape(N, G, Cg, HW).reshape(N, C, H, W)


def group_norm_ref(x, weight, bias, num_groups, eps=1e-5):
    """Pure-JAX reference (mirrors F.group_norm)."""
    N, C, H, W = x.shape
    Cg = C // num_groups
    xg = x.reshape(N, num_groups, Cg * H * W).astype(jnp.float32)
    mean = jnp.mean(xg, axis=-1, keepdims=True)
    var = jnp.mean((xg - mean) ** 2, axis=-1, keepdims=True)
    y = (xg - mean) / jnp.sqrt(var + eps)
    y = y.reshape(N, C, H, W)
    y = y * weight.reshape(1, C, 1, 1) + bias.reshape(1, C, 1, 1)
    return y.astype(x.dtype)


if __name__ == "__main__":
    key = jax.random.PRNGKey(0)

    # Module config: GroupNorm(num_groups=2, num_channels=4)
    num_groups = 2
    num_channels = 4
    eps = 1e-5

    # Deterministic parameter init matching reset_parameters():
    # weight = ones(C), bias = zeros(C)
    weight = jnp.ones((num_channels,), dtype=jnp.float32)
    bias = jnp.zeros((num_channels,), dtype=jnp.float32)

    # Input (N, C, H, W)
    x = jax.random.normal(key, (2, num_channels, 16, 16), dtype=jnp.float32)

    out = group_norm_pallas(x, weight, bias, num_groups, eps)
    out = jax.block_until_ready(out)

    ref = group_norm_ref(x, weight, bias, num_groups, eps)
    assert out.shape == x.shape and out.dtype == x.dtype
    assert jnp.max(jnp.abs(out - ref)) < 1e-4

    print("KERNEL_OK")
</pallas_src>

<mosaic_0001>
module attributes {stable_mosaic.version = 11 : i64} {
  func.func @kernel(%arg0: i32, %arg1: memref<8x512xf32, #tpu.memory_space<vmem>>, %arg2: memref<16x512xf32, #tpu.memory_space<vmem>>, %arg3: memref<8x512xf32, #tpu.memory_space<vmem>>) attributes {dimension_semantics = [#tpu.dimension_semantics<parallel>], iteration_bounds = array<i64: 1>, scalar_prefetch = 0 : i64, scratch_operands = 0 : i64, tpu.core_type = #tpu.core_type<tc>, window_params = [{transform_indices = @transform_0, window_bounds = array<i64: 8, 512>}, {pipeline_mode = #tpu.pipeline_mode<synchronous>, transform_indices = @transform_1, window_bounds = array<i64: 16, 512>}, {transform_indices = @transform_2, window_bounds = array<i64: 8, 512>}]} {
    %cst = arith.constant 0.000000e+00 : f32
    %0 = vector.broadcast %cst : f32 to vector<8x1xf32>
    %cst_0 = arith.constant 0.000000e+00 : f32
    %1 = vector.broadcast %cst_0 : f32 to vector<8x1xf32>
    %c0 = arith.constant 0 : index
    %c0_1 = arith.constant 0 : index
    %2 = vector.load %arg1[%c0, %c0_1] : memref<8x512xf32, #tpu.memory_space<vmem>>, vector<8x512xf32>
    %cst_2 = arith.constant dense<0.000000e+00> : vector<8xf32>
    %3 = vector.multi_reduction <add>, %2, %cst_2 [1] : vector<8x512xf32> to vector<8xf32>
    %4 = vector.shape_cast %3 : vector<8xf32> to vector<8x1xf32>
    %5 = arith.addf %0, %4 : vector<8x1xf32>
    %6 = arith.mulf %2, %2 : vector<8x512xf32>
    %cst_3 = arith.constant dense<0.000000e+00> : vector<8xf32>
    %7 = vector.multi_reduction <add>, %6, %cst_3 [1] : vector<8x512xf32> to vector<8xf32>
    %8 = vector.shape_cast %7 : vector<8xf32> to vector<8x1xf32>
    %9 = arith.addf %1, %8 : vector<8x1xf32>
    %cst_4 = arith.constant 0.001953125 : f32
    %10 = vector.broadcast %cst_4 : f32 to vector<8x1xf32>
    %11 = arith.mulf %5, %10 : vector<8x1xf32>
    %cst_5 = arith.constant 0.001953125 : f32
    %12 = vector.broadcast %cst_5 : f32 to vector<8x1xf32>
    %13 = arith.mulf %9, %12 : vector<8x1xf32>
    %14 = arith.mulf %11, %11 : vector<8x1xf32>
    %15 = arith.subf %13, %14 : vector<8x1xf32>
    %cst_6 = arith.constant 0.000000e+00 : f32
    %16 = vector.broadcast %cst_6 : f32 to vector<8x1xf32>
    %17 = arith.maximumf %15, %16 : vector<8x1xf32>
    %cst_7 = arith.constant 9.99999974E-6 : f32
    %18 = vector.broadcast %cst_7 : f32 to vector<8x1xf32>
    %19 = arith.addf %17, %18 : vector<8x1xf32>
    %20 = math.rsqrt %19 : vector<8x1xf32>
    %c0_8 = arith.constant 0 : index
    %c0_9 = arith.constant 0 : index
    %21 = vector.load %arg1[%c0_8, %c0_9] : memref<8x512xf32, #tpu.memory_space<vmem>>, vector<8x512xf32>
    %c0_10 = arith.constant 0 : index
    %c0_11 = arith.constant 0 : index
    %22 = vector.load %arg2[%c0_10, %c0_11] : memref<16x512xf32, #tpu.memory_space<vmem>>, vector<8x512xf32>
    %c8 = arith.constant 8 : index
    %c0_12 = arith.constant 0 : index
    %23 = vector.load %arg2[%c8, %c0_12] : memref<16x512xf32, #tpu.memory_space<vmem>>, vector<8x512xf32>
    %24 = vector.broadcast %11 : vector<8x1xf32> to vector<8x512xf32>
    %25 = arith.subf %21, %24 : vector<8x512xf32>
    %26 = vector.broadcast %20 : vector<8x1xf32> to vector<8x512xf32>
    %27 = arith.mulf %25, %26 : vector<8x512xf32>
    %28 = arith.mulf %27, %22 : vector<8x512xf32>
    %29 = arith.addf %28, %23 : vector<8x512xf32>
    %c0_13 = arith.constant 0 : index
    %c0_14 = arith.constant 0 : index
    %30 = vector.load %arg3[%c0_13, %c0_14] : memref<8x512xf32, #tpu.memory_space<vmem>>, vector<8x512xf32>
    tpu.vector_store %arg3[%c0_13, %c0_14], %29 {strides = array<i32>} : memref<8x512xf32, #tpu.memory_space<vmem>>, vector<8x512xf32>,
    return
  }
  func.func @transform_0(%arg0: i32) -> (i32, i32) {
    %c0_i32 = arith.constant 0 : i32
    %c0_i32_0 = arith.constant 0 : i32
    return %arg0, %c0_i32 : i32, i32
  }
  func.func @transform_1(%arg0: i32) -> (i32, i32) {
    %c0_i32 = arith.constant 0 : i32
    %c0_i32_0 = arith.constant 0 : i32
    %c0_i32_1 = arith.constant 0 : i32
    return %c0_i32, %c0_i32_0 : i32, i32
  }
  func.func @transform_2(%arg0: i32) -> (i32, i32) {
    %c0_i32 = arith.constant 0 : i32
    %c0_i32_0 = arith.constant 0 : i32
    return %arg0, %c0_i32 : i32, i32
  }
}

</mosaic_0001>

<bundles_post_ra>
// kernel: tpu_custom_call.1
= control target key start
LH: loop header
LB: loop body
LE: loop exit
PB: predicated region body
PF: predicated region fallthrough
CT: control target
= control target key end

     0   :  { %7 = vsyncpa [#allocation3], 0  ;;  %s251_s0 = inlined_call_operand.hbm [shape: f32[8,512], index: 0, kind: input, shape index: {}]   ;;  %s252_s1 = inlined_call_operand.hbm [shape: f32[16,512], index: 1, kind: input, shape index: {}]   ;;  %s253_s2 = inlined_call_operand.hbm [shape: f32[8,512], index: 2, kind: output, shape index: {}]  }
   0x1   :  { %8 = vsyncpa [#allocation6], 0 }
   0x2   :  { %9 = vsyncpa [#allocation4], 0  ;;  %s188_s9 = smov [#allocation2]   ;;  %s189_s11 = smov [#allocation5]  }
   0x3   :  { %s16_s10 = sshll.u32 %s188_s9, 4  ;;  %s25_s12 = sshll.u32 %s189_s11, 4  ;;  %s17_s10 = int_to_ptr.vmem [resolvable:$true] %s16_s10  ;;  %s208_s12 = int_to_ptr.vmem [resolvable:$true] %s25_s12 }
   0x4   :  { %s116_s15 = scalar_lea.hbm %s251_s0, 512 }
   0x5   :  { %p117_p0 = scmp.ne.s32.totalorder %s251_s0, %s116_s15  ;;  %p120_p1 = scmp.lt.u32.totalorder %s116_s15, %s251_s0 }
   0x7   :  { %p122_p2 = pnand %p120_p1, %p117_p0 }
   0x9   :  { %125 = shalt.err (!%p122_p2)
}
   0xa   :  { %s126_s20 = scalar_lea.vmem %s17_s10, 512  ;;  %p131_p4 = scmp.lt.s32.totalorder %s17_s10, %s17_s10 }
   0xb   :  { %p127_p3 = scmp.ne.s32.totalorder %s17_s10, %s126_s20  ;;  %p132_p5 = scmp.lt.s32.totalorder %s126_s20, %s126_s20 }
   0xd   :  { %p133_p6 = por %p132_p5, %p131_p4 }
   0xf   :  { %p134_p7 = pnand %p133_p6, %p127_p3 }
  0x11   :  { %137 = shalt.err (!%p134_p7)
}
  0x12   :  { %19 = dma.hbm_to_vmem [thread:$0]  %s251_s0, 512, %s17_s10, [#allocation3]  }
  0x13   :  { %s138_s25 = scalar_lea.hbm %s252_s1, 1024 }
  0x14   :  { %p139_p8 = scmp.ne.s32.totalorder %s252_s1, %s138_s25  ;;  %p142_p9 = scmp.lt.u32.totalorder %s138_s25, %s252_s1 }
  0x16   :  { %p144_p10 = pnand %p142_p9, %p139_p8 }
  0x18   :  { %147 = shalt.err (!%p144_p10)
}
  0x19   :  { %s148_s30 = scalar_lea.vmem %s208_s12, 1024  ;;  %p153_p12 = scmp.lt.s32.totalorder %s208_s12, %s208_s12 }
  0x1a   :  { %p149_p11 = scmp.ne.s32.totalorder %s208_s12, %s148_s30  ;;  %p154_p13 = scmp.lt.s32.totalorder %s148_s30, %s148_s30 }
  0x1c   :  { %p155_p0 = por %p154_p13, %p153_p12 }
  0x1e   :  { %p156_p1 = pnand %p155_p0, %p149_p11 }
  0x20   :  { %159 = shalt.err (!%p156_p1)
}
  0x21   :  { %s190_s0 = smov 512   ;;  %s191_s3 = smov 32  }
  0x22   :  { %31 = dma.hbm_to_vmem [thread:$0]  %s252_s1, 1024, %s208_s12, [#allocation6], %s190_s0, %s190_s0, %s191_s3  }
  0x23   :  { %182 = dma.done.wait [#allocation3], 512  }
  0x24   :  { %183 = vsyncadd [#allocation3], 4294966784 }
  0x25   :  { %184 = dma.done.wait [#allocation6], 1024  }
  0x26   :  { %185 = vsyncadd [#allocation6], 4294966272  ;;  %v38_v0 = vld [vmem:[#allocation2] sm:$0xff]  ;;  %v39_v1 = vld [vmem:[#allocation2 + $0x8] sm:$0xff]  ;;  %s192_s1 = smov [#allocation7]  }
  0x27   :  { %v40_v2 = vld [vmem:[#allocation2 + $0x10] sm:$0xff]  ;;  %v42_v3 = vadd.f32 %v39_v1, %v38_v0  ;;  %v48_v4 = vmul.f32 %v38_v0, %v38_v0  ;;  %v49_v5 = vmul.f32 %v39_v1, %v39_v1  ;;  %v41_v7 = vld [vmem:[#allocation2 + $0x18] sm:$0xff]  ;;  %v65_v26 = vld [vmem:[#allocation5] sm:$0xff]  ;;  %s99_s6 = sshll.u32 %s192_s1, 4  ;;  %s100_s6 = int_to_ptr.vmem [resolvable:$true] %s99_s6 }
  0x28   :  { %v50_v6 = vmul.f32 %v40_v2, %v40_v2  ;;  %v51_v9 = vmul.f32 %v41_v7, %v41_v7  ;;  %v66_v28 = vld [vmem:[#allocation5 + $0x8] sm:$0xff]  ;;  %v67_v29 = vld [vmem:[#allocation5 + $0x10] sm:$0xff]  ;;  %v68_v30 = vld [vmem:[#allocation5 + $0x18] sm:$0xff]  ;;  %s160_s7 = scalar_lea.vmem %s100_s6, 512  ;;  %p165_p3 = scmp.lt.s32.totalorder %s100_s6, %s100_s6 }
  0x29   :  { %v43_v8 = vadd.f32 %v42_v3, %v40_v2  ;;  %v52_v10 = vadd.f32 %v49_v5, %v48_v4  ;;  %v69_v31 = vld [vmem:[#allocation5 + $0x20] sm:$0xff]  ;;  %v70_v36 = vld [vmem:[#allocation5 + $0x28] sm:$0xff]  ;;  %v71_v37 = vld [vmem:[#allocation5 + $0x30] sm:$0xff]  ;;  %p161_p2 = scmp.ne.s32.totalorder %s100_s6, %s160_s7  ;;  %p166_p4 = scmp.lt.s32.totalorder %s160_s7, %s160_s7 }
  0x2a   :  { %v72_v38 = vld [vmem:[#allocation5 + $0x38] sm:$0xff] }
  0x2b   :  { %v44_v11 = vadd.f32 %v43_v8, %v41_v7  ;;  %v53_v12 = vadd.f32 %v52_v10, %v50_v6  ;;  %p167_p5 = por %p166_p4, %p165_p3 }
  0x2d   :  { %45 = vadd.xlane.f32.xlu0 %v44_v11  ;;  %v54_v13 = vadd.f32 %v53_v12, %v51_v9  ;;  %p168_p6 = pnand %p167_p5, %p161_p2 }
  0x31   :  { %55 = vadd.xlane.f32.xlu0 %v54_v13 }
  0xba   :  { %v46_v14 = vpop.xlane.xlu0 %45 }
  0xbb   :  { %v58_v15 = vmul.f32 0.001953125, %v46_v14 }
  0xbd   :  { %v60_v17 = vmul.f32 %v58_v15, %v58_v15  ;;  %v73_v22 = vsub.f32 %v38_v0, %v58_v15  ;;  %v74_v23 = vsub.f32 %v39_v1, %v58_v15  ;;  %v75_v24 = vsub.f32 %v40_v2, %v58_v15 }
  0xbe   :  { %v56_v16 = vpop.xlane.xlu0 %55  ;;  %v76_v25 = vsub.f32 %v41_v7, %v58_v15 }
  0xbf   :  { %v59_v18 = vmul.f32 0.001953125, %v56_v16 }
  0xc1   :  { %v61_v19 = vsub.f32 %v59_v18, %v60_v17 }
  0xc3   :  { %v62_v20 = vmax.f32 %v61_v19, 0.0 }
  0xc5   :  { %v63_v21 = vadd.f32 1e-05, %v62_v20 }
  0xc7   :  { %114 = vrsqrt.f32 %v63_v21 }
  0xd1   :  { %v115_v27 = vpop.eup %114 }
  0xd2   :  { %v77_v32 = vmul.f32 %v115_v27, %v73_v22  ;;  %v78_v33 = vmul.f32 %v115_v27, %v74_v23  ;;  %v79_v34 = vmul.f32 %v115_v27, %v75_v24  ;;  %v80_v35 = vmul.f32 %v115_v27, %v76_v25 }
  0xd4   :  { %v81_v39 = vmul.f32 %v77_v32, %v65_v26  ;;  %v82_v40 = vmul.f32 %v78_v33, %v66_v28  ;;  %v83_v41 = vmul.f32 %v79_v34, %v67_v29  ;;  %v84_v42 = vmul.f32 %v80_v35, %v68_v30 }
  0xd6   :  { %v85_v43 = vadd.f32 %v81_v39, %v69_v31  ;;  %v86_v44 = vadd.f32 %v82_v40, %v70_v36  ;;  %v87_v45 = vadd.f32 %v83_v41, %v71_v37  ;;  %v88_v46 = vadd.f32 %v84_v42, %v72_v38 }
  0xd8   :  { %89 = vst [vmem:[#allocation7] sm:$0xff] %v85_v43  ;;  %90 = vst [vmem:[#allocation7 + $0x8] sm:$0xff] %v86_v44 }
  0xd9   :  { %91 = vst [vmem:[#allocation7 + $0x10] sm:$0xff] %v87_v45  ;;  %92 = vst [vmem:[#allocation7 + $0x18] sm:$0xff] %v88_v46 }
  0xda   :  { %171 = shalt.err (!%p168_p6)
}
  0xdb   :  { %s172_s10 = scalar_lea.hbm %s253_s2, 512 }
  0xdc   :  { %p173_p7 = scmp.ne.s32.totalorder %s253_s2, %s172_s10  ;;  %p176_p8 = scmp.lt.u32.totalorder %s172_s10, %s253_s2 }
  0xde   :  { %p178_p9 = pnand %p176_p8, %p173_p7 }
  0xe0   :  { %181 = shalt.err (!%p178_p9)
}
  0xe1   :  { %102 = dma.vmem_to_hbm [thread:$0]  %s100_s6, 512, %s253_s2, [#allocation4]  }
  0xe2   :  { %186 = dma.done.wait [#allocation4], 512  }
  0xe3   :  { %187 = vsyncadd [#allocation4], 4294966784 }
  0xe4   :  { %106 = vsyncpa [#allocation3], 1 }
  0xe5   :  { %107 = vsyncpa [#allocation6], 1 }
  0xe6   :  { %108 = vsyncpa [#allocation4], 1 }

</bundles_post_ra>
